<compile_context>
chip_gen: v7x
topology: tpu7x:2x2x1
jax: 0.10.0
libtpu: 0.0.40
codegen_flags: <defaults>
</compile_context>

<pallas_src>
import functools

import jax
import jax.numpy as jnp
from jax.experimental import pallas as pl
from jax.experimental.pallas import tpu as pltpu


def _round_up(v, m):
    return (v + m - 1) // m * m


# ---------------------------------------------------------------------------
# Kernels.  Refs are always 2-D tiles: any size-1 batch dim is squeezed away
# by a `None` entry in the BlockSpec, so both layouts share these bodies.
# ---------------------------------------------------------------------------
def _gcn_up_direct_kernel(w_ref, x_ref, b_ref, o_ref):
    """Single-K-step fast path: no scratch, no init/finalize branches."""
    o_ref[...] = (
        jnp.dot(w_ref[...], x_ref[...], preferred_element_type=jnp.float32)
        + b_ref[...]
    ).astype(o_ref.dtype)


def _gcn_up_acc_kernel(w_ref, x_ref, b_ref, o_ref, acc_ref, *, k_axis):
    """Multi-K-step path: f32 VMEM accumulator, bias folded into the init."""

    @pl.when(pl.program_id(k_axis) == 0)
    def _init():
        # Bias is the initial value of the accumulator (saves a full-tile
        # VPU add + extra acc read in the epilogue).
        acc_ref[...] = jnp.broadcast_to(b_ref[...], acc_ref.shape).astype(
            jnp.float32
        )

    acc_ref[...] += jnp.dot(
        w_ref[...], x_ref[...], preferred_element_type=jnp.float32
    )

    @pl.when(pl.program_id(k_axis) == pl.num_programs(k_axis) - 1)
    def _finalize():
        o_ref[...] = acc_ref[...].astype(o_ref.dtype)


# ---------------------------------------------------------------------------
# Wrapper.
# ---------------------------------------------------------------------------
def gcn_up(x, weight, bias, *, tm_cap=256, tn_cap=1024, tk_cap=512):
    """x: (B, in_nodes, C), weight: (out_nodes, in_nodes), bias: (out_nodes,).

    Returns (B, out_nodes, C), matching the PyTorch GCN_UP forward.
    """
    B, K, C = x.shape
    M = weight.shape[0]

    # ---- K (reduction) tiling: the ONLY axis we ever zero-pad. -----------
    if K <= tk_cap:
        TK, Kp = K, K
    else:
        TK = tk_cap
        Kp = _round_up(K, TK)
    Kg = Kp // TK

    # ---- M tiling: ragged trailing block, no padding, no output slice. ---
    TM = M if M <= tm_cap else tm_cap
    Mg = pl.cdiv(M, TM)

    bias2d = bias.reshape(M, 1)

    cost = pl.CostEstimate(
        flops=2 * B * M * C * K,
        transcendentals=0,
        bytes_accessed=(
            x.size * x.dtype.itemsize
            + weight.size * weight.dtype.itemsize
            + bias.size * bias.dtype.itemsize
            + B * M * C * x.dtype.itemsize
        ),
    )

    if C >= 128:
        # -------------------------------------------------------------------
        # Lane-dense-enough C: keep the original (B, K, C) layout.  No wrapper
        # transpose / reshape / pad / slice; the kernel writes directly into
        # the final (B, M, C) result.  B is a leading parallel axis (megacore).
        # -------------------------------------------------------------------
        TC = C if C <= tn_cap else tn_cap
        Cg = pl.cdiv(C, TC)

        w_in, x_in = weight, x
        if Kp != K:  # zero-pad the reduction axis only
            w_in = jnp.pad(w_in, ((0, 0), (0, Kp - K)))
            x_in = jnp.pad(x_in, ((0, 0), (0, Kp - K), (0, 0)))

        grid = (B, Mg, Cg, Kg)
        if Kg == 1:
            kernel = _gcn_up_direct_kernel
            scratch = []
        else:
            kernel = functools.partial(_gcn_up_acc_kernel, k_axis=3)
            scratch = [pltpu.VMEM((TM, TC), jnp.float32)]

        return pl.pallas_call(
            kernel,
            out_shape=jax.ShapeDtypeStruct((B, M, C), x.dtype),
            grid_spec=pltpu.PrefetchScalarGridSpec(
                num_scalar_prefetch=0,
                grid=grid,
                in_specs=[
                    pl.BlockSpec((TM, TK), lambda b, i, j, k: (i, k)),  # W
                    pl.BlockSpec((None, TK, TC), lambda b, i, j, k: (b, k, j)),  # X
                    pl.BlockSpec((TM, 1), lambda b, i, j, k: (i, 0)),  # bias
                ],
                out_specs=pl.BlockSpec(
                    (None, TM, TC), lambda b, i, j, k: (b, i, j)
                ),
                scratch_shapes=scratch,
            ),
            compiler_params=pltpu.CompilerParams(
                dimension_semantics=(
                    "parallel",
                    "parallel",
                    "parallel",
                    "arbitrary",
                ),
            ),
            cost_estimate=cost,
        )(w_in, x_in, bias2d)

    # -----------------------------------------------------------------------
    # Small C: fold the batch into the lane dim so stores stay lane-dense.
    # allow_input_fusion lets XLA fuse the transpose/reshape into the input
    # DMA instead of materializing x_flat in HBM.
    # -----------------------------------------------------------------------
    N = B * C
    x_flat = jnp.transpose(x, (1, 0, 2)).reshape(K, N)

    TN = N if N <= tn_cap else tn_cap
    if Mg == 1 and N >= 256:
        # Give the v7x megacore a parallel axis with extent >= 2.
        TN = min(TN, _round_up(pl.cdiv(N, 2), 128))
    Ng = pl.cdiv(N, TN)

    w_in, x_in = weight, x_flat
    if Kp != K:  # zero-pad the reduction axis only
        w_in = jnp.pad(w_in, ((0, 0), (0, Kp - K)))
        x_in = jnp.pad(x_in, ((0, Kp - K), (0, 0)))

    grid = (Mg, Ng, Kg)
    if Kg == 1:
        kernel = _gcn_up_direct_kernel
        scratch = []
    else:
        kernel = functools.partial(_gcn_up_acc_kernel, k_axis=2)
        scratch = [pltpu.VMEM((TM, TN), jnp.float32)]

    out_flat = pl.pallas_call(
        kernel,
        out_shape=jax.ShapeDtypeStruct((M, N), x.dtype),
        grid_spec=pltpu.PrefetchScalarGridSpec(
            num_scalar_prefetch=0,
            grid=grid,
            in_specs=[
                pl.BlockSpec((TM, TK), lambda i, j, k: (i, k)),  # W
                pl.BlockSpec((TK, TN), lambda i, j, k: (k, j)),  # X (folded)
                pl.BlockSpec((TM, 1), lambda i, j, k: (i, 0)),  # bias
            ],
            out_specs=pl.BlockSpec((TM, TN), lambda i, j, k: (i, j)),
            scratch_shapes=scratch,
        ),
        compiler_params=pltpu.CompilerParams(
            dimension_semantics=("parallel", "parallel", "arbitrary"),
            allow_input_fusion=[False, True, False],
        ),
        cost_estimate=cost,
    )(w_in, x_in, bias2d)

    # Unfold back to (B, out_nodes, C).
    return jnp.transpose(out_flat.reshape(M, B, C), (1, 0, 2))


if __name__ == "__main__":
    key = jax.random.PRNGKey(0)
    kx, kw, kb, kx2, kx3, kw3 = jax.random.split(key, 6)

    # Small shapes consistent with the forward: X is (B, in_nodes, C).
    B, in_nodes, out_nodes, C = 2, 8, 32, 16

    x = jax.random.normal(kx, (B, in_nodes, C), dtype=jnp.float32)
    # Deterministic init matching nn.Linear's uniform(-1/sqrt(in), 1/sqrt(in)).
    bound = 1.0 / (in_nodes ** 0.5)
    weight = jax.random.uniform(kw, (out_nodes, in_nodes), jnp.float32, -bound, bound)
    bias = jax.random.uniform(kb, (out_nodes,), jnp.float32, -bound, bound)

    fn = jax.jit(gcn_up)

    # 1) Small-C case: folded lane-dense path, single-K-step fast kernel.
    out = jax.block_until_ready(fn(x, weight, bias))
    ref = jnp.einsum("oi,bic->boc", weight, x) + bias[None, :, None]
    assert out.shape == (B, out_nodes, C)
    assert jnp.allclose(out, ref, atol=1e-5, rtol=1e-5)

    # 2) C >= 128 case: no-transpose (B, K, C) layout path.
    C2 = 128
    x2 = jax.random.normal(kx2, (B, in_nodes, C2), dtype=jnp.float32)
    out2 = jax.block_until_ready(fn(x2, weight, bias))
    ref2 = jnp.einsum("oi,bic->boc", weight, x2) + bias[None, :, None]
    assert out2.shape == (B, out_nodes, C2)
    assert jnp.allclose(out2, ref2, atol=1e-5, rtol=1e-5)

    # 3) Multi-step K reduction: exercises the f32-accumulator kernel.
    K3 = 256
    x3 = jax.random.normal(kx3, (B, K3, C), dtype=jnp.float32)
    bound3 = 1.0 / (K3 ** 0.5)
    w3 = jax.random.uniform(kw3, (out_nodes, K3), jnp.float32, -bound3, bound3)
    fn3 = jax.jit(functools.partial(gcn_up, tk_cap=128))
    out3 = jax.block_until_ready(fn3(x3, w3, bias))
    ref3 = jnp.einsum("oi,bic->boc", w3, x3) + bias[None, :, None]
    assert out3.shape == (B, out_nodes, C)
    assert jnp.allclose(out3, ref3, atol=1e-4, rtol=1e-4)

    print("KERNEL_OK")
</pallas_src>

<mosaic_0001>
module attributes {stable_mosaic.version = 11 : i64} {
  func.func @_gcn_up_direct_kernel(%arg0: i32, %arg1: i32, %arg2: i32, %arg3: memref<32x8xf32, #tpu.memory_space<vmem>>, %arg4: memref<8x32xf32, #tpu.memory_space<vmem>>, %arg5: memref<32x1xf32, #tpu.memory_space<vmem>>, %arg6: memref<32x32xf32, #tpu.memory_space<vmem>>) attributes {dimension_semantics = [#tpu.dimension_semantics<parallel>, #tpu.dimension_semantics<parallel>, #tpu.dimension_semantics<arbitrary>], iteration_bounds = array<i64: 1, 1, 1>, scalar_prefetch = 0 : i64, scratch_operands = 0 : i64, tpu.core_type = #tpu.core_type<tc>, window_params = [{transform_indices = @transform_0, window_bounds = array<i64: 32, 8>}, {transform_indices = @transform_1, window_bounds = array<i64: 8, 32>}, {transform_indices = @transform_2, window_bounds = array<i64: 32, 1>}, {transform_indices = @transform_3, window_bounds = array<i64: 32, 32>}]} {
    %c0 = arith.constant 0 : index
    %c0_0 = arith.constant 0 : index
    %0 = vector.load %arg3[%c0, %c0_0] : memref<32x8xf32, #tpu.memory_space<vmem>>, vector<32x8xf32>
    %c0_1 = arith.constant 0 : index
    %c0_2 = arith.constant 0 : index
    %1 = vector.load %arg4[%c0_1, %c0_2] : memref<8x32xf32, #tpu.memory_space<vmem>>, vector<8x32xf32>
    %cst = arith.constant dense<0.000000e+00> : vector<32x32xf32>
    %2 = tpu.matmul %0, %1, %cst {dimension_numbers = #tpu.dot_dimension_numbers<[1], [0], [0], [1], [0, 0, 1, 1], [], []>} : vector<32x8xf32>, vector<8x32xf32>, vector<32x32xf32> -> vector<32x32xf32>
    %c0_3 = arith.constant 0 : index
    %c0_4 = arith.constant 0 : index
    %3 = vector.load %arg5[%c0_3, %c0_4] : memref<32x1xf32, #tpu.memory_space<vmem>>, vector<32x1xf32>
    %4 = vector.broadcast %3 : vector<32x1xf32> to vector<32x32xf32>
    %5 = arith.addf %2, %4 : vector<32x32xf32>
    %c0_5 = arith.constant 0 : index
    %c0_6 = arith.constant 0 : index
    %6 = vector.load %arg6[%c0_5, %c0_6] : memref<32x32xf32, #tpu.memory_space<vmem>>, vector<32x32xf32>
    tpu.vector_store %arg6[%c0_5, %c0_6], %5 {strides = array<i32>} : memref<32x32xf32, #tpu.memory_space<vmem>>, vector<32x32xf32>,
    return
  }
  func.func @transform_0(%arg0: i32, %arg1: i32, %arg2: i32) -> (i32, i32) {
    %c0_i32 = arith.constant 0 : i32
    return %arg0, %arg2 : i32, i32
  }
  func.func @transform_1(%arg0: i32, %arg1: i32, %arg2: i32) -> (i32, i32) {
    %c0_i32 = arith.constant 0 : i32
    return %arg2, %arg1 : i32, i32
  }
  func.func @transform_2(%arg0: i32, %arg1: i32, %arg2: i32) -> (i32, i32) {
    %c0_i32 = arith.constant 0 : i32
    %c0_i32_0 = arith.constant 0 : i32
    return %arg0, %c0_i32 : i32, i32
  }
  func.func @transform_3(%arg0: i32, %arg1: i32, %arg2: i32) -> (i32, i32) {
    %c0_i32 = arith.constant 0 : i32
    return %arg0, %arg1 : i32, i32
  }
}

</mosaic_0001>

<bundles_post_ra>
// kernel: gcn_up.1
= control target key start
LH: loop header
LB: loop body
LE: loop exit
PB: predicated region body
PF: predicated region fallthrough
CT: control target
= control target key end

     0   :  { %vm43_vm0 = vcmask 64512   ;;  %v172_v3 = vmov 0   ;;  %vm141_vm1 = vcmask 261120   ;;  %s236_s1 = inlined_call_operand.vmem [shape: f32[8,32], index: 1, kind: input, shape index: {}]   ;;  %s237_s0 = inlined_call_operand.vmem [shape: f32[32,8], index: 0, kind: input, shape index: {}]   ;;  %s238_s2 = inlined_call_operand.vmem [shape: f32[32,1], index: 2, kind: input, shape index: {}]   ;;  %s239_s3 = inlined_call_operand.vmem [shape: f32[32,32], index: 3, kind: output, shape index: {}]  }
   0x1   :  { %v18_v0 = vld [vmem:[%s236_s1] sm:$0xff]  ;;  %v16_v2 = vld [vmem:[%s237_s0 + $0x10] sm:$0xff]  ;;  %171 = vset.pattern.permute.xlu1 %v172_v3  ;;  %170 = vset.pattern.permute.xlu0 %v172_v3  ;;  %v15_v4 = vld [vmem:[%s237_s0 + $0x8] sm:$0xff] }
   0x2   :  { %v14_v1 = vld [vmem:[%s237_s0] sm:$0xff]  ;;  %159 = vmatprep.subr.mxu0 %v18_v0  ;;  %167 = vmatprep.subr.mxu1 %v18_v0  ;;  %v17_v5 = vld [vmem:[%s237_s0 + $0x18] sm:$0xff]  ;;  %v21_v6 = vld [vmem:[%s238_s2 + $0x10] sm:$0xff] }
   0x3   :  { %160 = vmatpush3.msra.mxu0 %v18_v0  ;;  %168 = vmatpush3.msra.mxu1 %v18_v0  ;;  %v19_v7 = vld [vmem:[%s238_s2] sm:$0xff]  ;;  %v22_v8 = vld [vmem:[%s238_s2 + $0x18] sm:$0xff]  ;;  %v20_v9 = vld [vmem:[%s238_s2 + $0x8] sm:$0xff] }
   0x4   :  { %161 = vmatprep.mubr.msk.f32.mxu0 %vm43_vm0, %v14_v1  ;;  %164 = vmatprep.mubr.msk.f32.mxu1 %vm43_vm0, %v16_v2 }
   0x5   :  { %162 = vmatmul.mubr.msk.f32.vlgmr.msra.gmra.mrb[0].mxu0 %vm43_vm0, %v15_v4  ;;  %165 = vmatmul.mubr.msk.f32.vlgmr.msra.gmra.mrb[0].mxu1 %vm43_vm0, %v17_v5 }
   0x6   :  { %35 = vperm.xlu1 %171, %v21_v6   ;;  %25 = vperm.xlu0 %170, %v19_v7  }
   0xa   :  { %40 = vperm.xlu1 %171, %v22_v8   ;;  %30 = vperm.xlu0 %170, %v20_v9  }
  0x85   :  { %v36_v10 = vpop.permute.xlu1 %35  ;;  %v26_v11 = vpop.permute.xlu0 %25 }
  0x89   :  { %v41_v12 = vpop.permute.xlu1 %40  ;;  %v31_v13 = vpop.permute.xlu0 %30 }
  0xd8   :  { %v163_v14 = vpop.f32.mrb[0].mxu0  ;;  %v166_v15 = vpop.f32.mrb[0].mxu1 }
  0xd9   :  { %v128_v16 = vadd.f32 %v163_v14, %v31_v13  ;;  %v138_v17 = vadd.f32 %v166_v15, %v41_v12  ;;  %v122_v18 = vpop.f32.mrb[1].mxu0  ;;  %v132_v19 = vpop.f32.mrb[1].mxu1 }
  0xda   :  { %v123_v20 = vadd.f32 %v122_v18, %v26_v11  ;;  %v133_v21 = vadd.f32 %v132_v19, %v36_v10 }
  0xdb   :  { %143 = vst.msk [vmem:[%s239_s3 + $0x8] sm:$0xff] %vm141_vm1, %v128_v16  ;;  %145 = vst.msk [vmem:[%s239_s3 + $0x18] sm:$0xff] %vm141_vm1, %v138_v17 }
  0xdc   :  { %142 = vst.msk [vmem:[%s239_s3] sm:$0xff] %vm141_vm1, %v123_v20  ;;  %144 = vst.msk [vmem:[%s239_s3 + $0x10] sm:$0xff] %vm141_vm1, %v133_v21 }

</bundles_post_ra>
